<compile_context>
chip_gen: v7x
topology: tpu7x:2x2x1
jax: 0.10.0
libtpu: 0.0.40
codegen_flags: <defaults>
</compile_context>

<pallas_src>
import jax
import jax.numpy as jnp
from jax.experimental import pallas as pl
from jax.experimental.pallas import tpu as pltpu

E_MIN = 0.5
E_MAX = 1.0

_LANES = 128            # lane width of the dense pixel plane
_MAX_TILE_ROWS = 4096   # 4096*128 = 512K px/tile; pass-1 f32 ~= 16 MiB double-buffered


def _tile_rows(rows, n):
    """Pick a sublane-aligned row-tile size (multiple of 8 or the full extent)."""
    ts = min(_MAX_TILE_ROWS, rows)
    # Aim for >= ~8 total grid steps when the image is big enough: keeps both
    # v7x TensorCores busy and the DMA pipeline warm.
    want_steps_per_image = pl.cdiv(8, n)
    ts = min(ts, max(8, pl.cdiv(rows, want_steps_per_image)))
    if ts >= rows:
        return rows                      # full extent: always a legal block dim
    return max(8, (ts // 8) * 8)         # multiple of 8


def _make_gray_kernel(ts, lanes, rows):
    ragged = (rows % ts) != 0

    def kernel(x_ref, gray_ref, min_ref, max_ref):
        # x_ref: (3, ts, lanes) | gray_ref: (ts, lanes) | min/max_ref: (8, lanes)
        r = x_ref[0].astype(jnp.float32)
        g = x_ref[1].astype(jnp.float32)
        b = x_ref[2].astype(jnp.float32)
        gray = 0.299 * r + 0.587 * g + 0.114 * b
        gray_ref[...] = gray

        if ragged:
            # Last row-tile hangs past the array: input rows beyond `rows` are
            # undefined, so mask them out of the partial min/max (the gray
            # store itself is masked by Pallas on writeback).
            row = (jax.lax.broadcasted_iota(jnp.int32, (ts, lanes), 0)
                   + pl.program_id(1) * ts)
            valid = row < rows
            lo = jnp.where(valid, gray, jnp.inf)
            hi = jnp.where(valid, gray, -jnp.inf)
        else:
            lo = gray
            hi = gray

        gmin = jnp.min(lo, axis=0, keepdims=True)      # (1, lanes)
        gmax = jnp.max(hi, axis=0, keepdims=True)      # (1, lanes)
        min_ref[...] = jnp.broadcast_to(gmin, (8, lanes))
        max_ref[...] = jnp.broadcast_to(gmax, (8, lanes))

    return kernel


def _make_rescale_kernel(e_min, e_max):
    e_min = float(e_min)
    span = float(e_max) - float(e_min)

    def kernel(mm_ref, gray_ref, out_ref):
        # mm_ref: SMEM (2,) f32 = [global_min, global_max]
        min_v = mm_ref[0]
        max_v = mm_ref[1]
        scale = span / (max_v - min_v)       # one scalar divide per grid step
        offset = e_min - min_v * scale
        out_ref[...] = gray_ref[...] * scale + offset

    return kernel


def get_exptar(in_img, e_min=E_MIN, e_max=E_MAX):
    n, c, h, w = in_img.shape
    assert c == 3, "Get_exptar expects an RGB image (C == 3)"
    p = h * w

    # ---- dense pixel plane: (N, 3, rows, 128), last dim lane-dense ----------
    x = in_img.reshape(n, c, p)
    pad = (-p) % _LANES
    if pad:
        # Edge-replicate: padded pixels duplicate real pixels, so the global
        # min/max is unchanged; the padding is sliced off again at the end.
        x = jnp.pad(x, ((0, 0), (0, 0), (0, pad)), mode="edge")
    p_pad = p + pad
    rows = p_pad // _LANES
    x = x.reshape(n, c, rows, _LANES)

    ts = _tile_rows(rows, n)
    gj = pl.cdiv(rows, ts)
    grid = (n, gj)

    cparams = pltpu.CompilerParams(
        dimension_semantics=("parallel", "parallel"),   # megacore-shardable
        vmem_limit_bytes=32 * 1024 * 1024,
    )

    # ---- Pass 1: grayscale plane + per-tile min/max partials (3R + ~1W) -----
    gray, mins, maxs = pl.pallas_call(
        _make_gray_kernel(ts, _LANES, rows),
        out_shape=(
            jax.ShapeDtypeStruct((n, rows, _LANES), jnp.float32),
            jax.ShapeDtypeStruct((n, gj, 8, _LANES), jnp.float32),
            jax.ShapeDtypeStruct((n, gj, 8, _LANES), jnp.float32),
        ),
        grid=grid,
        in_specs=[pl.BlockSpec((None, 3, ts, _LANES), lambda i, j: (i, 0, j, 0))],
        out_specs=(
            pl.BlockSpec((None, ts, _LANES), lambda i, j: (i, j, 0)),
            pl.BlockSpec((None, None, 8, _LANES), lambda i, j: (i, j, 0, 0)),
            pl.BlockSpec((None, None, 8, _LANES), lambda i, j: (i, j, 0, 0)),
        ),
        compiler_params=cparams,
    )(x)

    # Global min/max over the tiny partial planes; handed to pass 2 via SMEM.
    mm = jnp.stack([jnp.min(mins), jnp.max(maxs)]).astype(jnp.float32)

    # ---- Pass 2: out = gray * scale + offset (1R + 1W, one FMA per element) -
    out = pl.pallas_call(
        _make_rescale_kernel(e_min, e_max),
        out_shape=jax.ShapeDtypeStruct((n, rows, _LANES), jnp.float32),
        grid=grid,
        in_specs=[
            pl.BlockSpec(memory_space=pltpu.MemorySpace.SMEM),  # [min, max]
            pl.BlockSpec((None, ts, _LANES), lambda i, j: (i, j, 0)),
        ],
        out_specs=pl.BlockSpec((None, ts, _LANES), lambda i, j: (i, j, 0)),
        compiler_params=cparams,
    )(mm, gray)

    out = out.reshape(n, p_pad)[:, :p]
    # NOTE: if the consumer can take a lane-dense (N, 1, H*W) plane, returning
    # that instead avoids a relayout copy for small-W images.
    return out.reshape(n, 1, h, w)


def _reference(in_img, e_min=E_MIN, e_max=E_MAX):
    x = in_img.astype(jnp.float32)
    gray = 0.299 * x[:, 0:1] + 0.587 * x[:, 1:2] + 0.114 * x[:, 2:3]
    max_v = jnp.max(gray)
    min_v = jnp.min(gray)
    return (gray - min_v) * (e_max - e_min) / (max_v - min_v) + e_min


if __name__ == "__main__":
    key = jax.random.PRNGKey(0)
    x = jax.random.uniform(key, (2, 3, 16, 16), dtype=jnp.float32)

    out = jax.block_until_ready(get_exptar(x))

    ref = _reference(x)
    assert out.shape == (2, 1, 16, 16)
    assert jnp.allclose(out, ref, atol=1e-5, rtol=1e-5)
    assert float(jnp.min(out)) >= E_MIN - 1e-5
    assert float(jnp.max(out)) <= E_MAX + 1e-5

    print("KERNEL_OK")
</pallas_src>

<mosaic_0001>
module attributes {stable_mosaic.version = 11 : i64} {
  func.func @kernel(%arg0: i32, %arg1: i32, %arg2: memref<1x3x2x128xf32, #tpu.memory_space<vmem>>, %arg3: memref<1x2x128xf32, #tpu.memory_space<vmem>>, %arg4: memref<1x1x8x128xf32, #tpu.memory_space<vmem>>, %arg5: memref<1x1x8x128xf32, #tpu.memory_space<vmem>>) attributes {dimension_semantics = [#tpu.dimension_semantics<parallel>, #tpu.dimension_semantics<parallel>], iteration_bounds = array<i64: 2, 1>, scalar_prefetch = 0 : i64, scratch_operands = 0 : i64, tpu.core_type = #tpu.core_type<tc>, window_params = [{transform_indices = @transform_0, window_bounds = array<i64: 1, 3, 2, 128>}, {transform_indices = @transform_1, window_bounds = array<i64: 1, 2, 128>}, {transform_indices = @transform_2, window_bounds = array<i64: 1, 1, 8, 128>}, {transform_indices = @transform_3, window_bounds = array<i64: 1, 1, 8, 128>}]} {
    %c0 = arith.constant 0 : index
    %c0_0 = arith.constant 0 : index
    %c0_1 = arith.constant 0 : index
    %c0_2 = arith.constant 0 : index
    %0 = vector.load %arg2[%c0, %c0_0, %c0_1, %c0_2] : memref<1x3x2x128xf32, #tpu.memory_space<vmem>>, vector<1x1x2x128xf32>
    %1 = vector.shape_cast %0 : vector<1x1x2x128xf32> to vector<2x128xf32>
    %c0_3 = arith.constant 0 : index
    %c1 = arith.constant 1 : index
    %c0_4 = arith.constant 0 : index
    %c0_5 = arith.constant 0 : index
    %2 = vector.load %arg2[%c0_3, %c1, %c0_4, %c0_5] : memref<1x3x2x128xf32, #tpu.memory_space<vmem>>, vector<1x1x2x128xf32>
    %3 = vector.shape_cast %2 : vector<1x1x2x128xf32> to vector<2x128xf32>
    %c0_6 = arith.constant 0 : index
    %c2 = arith.constant 2 : index
    %c0_7 = arith.constant 0 : index
    %c0_8 = arith.constant 0 : index
    %4 = vector.load %arg2[%c0_6, %c2, %c0_7, %c0_8] : memref<1x3x2x128xf32, #tpu.memory_space<vmem>>, vector<1x1x2x128xf32>
    %5 = vector.shape_cast %4 : vector<1x1x2x128xf32> to vector<2x128xf32>
    %cst = arith.constant 2.990000e-01 : f32
    %6 = vector.broadcast %cst : f32 to vector<2x128xf32>
    %7 = arith.mulf %6, %1 : vector<2x128xf32>
    %cst_9 = arith.constant 5.870000e-01 : f32
    %8 = vector.broadcast %cst_9 : f32 to vector<2x128xf32>
    %9 = arith.mulf %8, %3 : vector<2x128xf32>
    %10 = arith.addf %7, %9 : vector<2x128xf32>
    %cst_10 = arith.constant 1.140000e-01 : f32
    %11 = vector.broadcast %cst_10 : f32 to vector<2x128xf32>
    %12 = arith.mulf %11, %5 : vector<2x128xf32>
    %13 = arith.addf %10, %12 : vector<2x128xf32>
    %c0_11 = arith.constant 0 : index
    %c0_12 = arith.constant 0 : index
    %c0_13 = arith.constant 0 : index
    %14 = vector.load %arg3[%c0_11, %c0_12, %c0_13] : memref<1x2x128xf32, #tpu.memory_space<vmem>>, vector<1x2x128xf32>
    %15 = vector.shape_cast %14 : vector<1x2x128xf32> to vector<2x128xf32>
    %16 = vector.shape_cast %13 : vector<2x128xf32> to vector<1x2x128xf32>
    tpu.vector_store %arg3[%c0_11, %c0_12, %c0_13], %16 {strides = array<i32>} : memref<1x2x128xf32, #tpu.memory_space<vmem>>, vector<1x2x128xf32>,
    %cst_14 = arith.constant dense<0x7F800000> : vector<128xf32>
    %17 = vector.multi_reduction <minimumf>, %13, %cst_14 [0] : vector<2x128xf32> to vector<128xf32>
    %18 = vector.shape_cast %17 : vector<128xf32> to vector<1x128xf32>
    %cst_15 = arith.constant dense<0xFF800000> : vector<128xf32>
    %19 = vector.multi_reduction <maximumf>, %13, %cst_15 [0] : vector<2x128xf32> to vector<128xf32>
    %20 = vector.shape_cast %19 : vector<128xf32> to vector<1x128xf32>
    %21 = vector.shape_cast %18 : vector<1x128xf32> to vector<1x128xf32>
    %22 = vector.broadcast %21 : vector<1x128xf32> to vector<8x128xf32>
    %c0_16 = arith.constant 0 : index
    %c0_17 = arith.constant 0 : index
    %c0_18 = arith.constant 0 : index
    %c0_19 = arith.constant 0 : index
    %23 = vector.load %arg4[%c0_16, %c0_17, %c0_18, %c0_19] : memref<1x1x8x128xf32, #tpu.memory_space<vmem>>, vector<1x1x8x128xf32>
    %24 = vector.shape_cast %23 : vector<1x1x8x128xf32> to vector<8x128xf32>
    %25 = vector.shape_cast %22 : vector<8x128xf32> to vector<1x1x8x128xf32>
    tpu.vector_store %arg4[%c0_16, %c0_17, %c0_18, %c0_19], %25 {strides = array<i32>} : memref<1x1x8x128xf32, #tpu.memory_space<vmem>>, vector<1x1x8x128xf32>,
    %26 = vector.shape_cast %20 : vector<1x128xf32> to vector<1x128xf32>
    %27 = vector.broadcast %26 : vector<1x128xf32> to vector<8x128xf32>
    %c0_20 = arith.constant 0 : index
    %c0_21 = arith.constant 0 : index
    %c0_22 = arith.constant 0 : index
    %c0_23 = arith.constant 0 : index
    %28 = vector.load %arg5[%c0_20, %c0_21, %c0_22, %c0_23] : memref<1x1x8x128xf32, #tpu.memory_space<vmem>>, vector<1x1x8x128xf32>
    %29 = vector.shape_cast %28 : vector<1x1x8x128xf32> to vector<8x128xf32>
    %30 = vector.shape_cast %27 : vector<8x128xf32> to vector<1x1x8x128xf32>
    tpu.vector_store %arg5[%c0_20, %c0_21, %c0_22, %c0_23], %30 {strides = array<i32>} : memref<1x1x8x128xf32, #tpu.memory_space<vmem>>, vector<1x1x8x128xf32>,
    return
  }
  func.func @transform_0(%arg0: i32, %arg1: i32) -> (i32, i32, i32, i32) {
    %c0_i32 = arith.constant 0 : i32
    %c0_i32_0 = arith.constant 0 : i32
    %c0_i32_1 = arith.constant 0 : i32
    return %arg0, %c0_i32, %arg1, %c0_i32_0 : i32, i32, i32, i32
  }
  func.func @transform_1(%arg0: i32, %arg1: i32) -> (i32, i32, i32) {
    %c0_i32 = arith.constant 0 : i32
    %c0_i32_0 = arith.constant 0 : i32
    return %arg0, %arg1, %c0_i32 : i32, i32, i32
  }
  func.func @transform_2(%arg0: i32, %arg1: i32) -> (i32, i32, i32, i32) {
    %c0_i32 = arith.constant 0 : i32
    %c0_i32_0 = arith.constant 0 : i32
    %c0_i32_1 = arith.constant 0 : i32
    return %arg0, %arg1, %c0_i32, %c0_i32_0 : i32, i32, i32, i32
  }
  func.func @transform_3(%arg0: i32, %arg1: i32) -> (i32, i32, i32, i32) {
    %c0_i32 = arith.constant 0 : i32
    %c0_i32_0 = arith.constant 0 : i32
    %c0_i32_1 = arith.constant 0 : i32
    return %arg0, %arg1, %c0_i32, %c0_i32_0 : i32, i32, i32, i32
  }
}

</mosaic_0001>

<bundles_post_ra>
// kernel: tpu_custom_call.1
= control target key start
LH: loop header
LB: loop body
LE: loop exit
PB: predicated region body
PF: predicated region fallthrough
CT: control target
= control target key end

     0   :  { %9 = vsyncpa [#allocation3], 0  ;;  %s998_s0 = inlined_call_operand.hbm [shape: f32[2,3,2,128], index: 0, kind: input, shape index: {}]   ;;  %s999_s1 = inlined_call_operand.hbm [shape: f32[2,2,128], index: 1, kind: output, shape index: {0}]   ;;  %s1000_s2 = inlined_call_operand.hbm [shape: f32[2,1,8,128], index: 2, kind: output, shape index: {1}]   ;;  %s1001_s3 = inlined_call_operand.hbm [shape: f32[2,1,8,128], index: 3, kind: output, shape index: {2}]  }
   0x1   :  { %11 = vsyncpa [#allocation3 + $0x1], 0 }
   0x2   :  { %12 = vsyncpa [#allocation4], 0 }
   0x3   :  { %14 = vsyncpa [#allocation4 + $0x1], 0 }
   0x4   :  { %15 = vsyncpa [#allocation7], 0 }
   0x5   :  { %17 = vsyncpa [#allocation7 + $0x1], 0  ;;  %s749_s12 = smov 0   ;;  %s751_s13 = smov 0  }
   0x6   :  { %s753_s14 = smov 0   ;;  %s755_s15 = smov 0  }
   0x7   :  { %s757_s16 = smov 0   ;;  %s759_s17 = smov 0  }
   0x8 LB: > { %s780_s18 = sadd.s32 4294967295, %s721_s17   ;;  %s454_s19 = sadd.s32 4294967294, %s721_s17   ;;  %s721_s17 = sphi %s759_s17, %s23_s17   ;;  %s717_s16 = sphi %s757_s16, %s1016_s16   ;;  %s713_s15 = sphi %s755_s15, %s1015_s15   ;;  %s709_s14 = sphi %s753_s14, %s1014_s14   ;;  %s705_s13 = sphi %s751_s13, %s1013_s13   ;;  %s701_s12 = sphi %s749_s12, %s1012_s12  }
   0x9   : > { %s35_s20 = sadd.s32 1, %s717_s16  ;;  %s44_s21 = sadd.s32 1, %s709_s14 }
   0xa   : > { %p37_p0 = scmp.ge.s32.totalorder %s35_s20, 2  ;;  %p51_p1 = scmp.ne.s32.totalorder %s709_s14, %s705_s13 }
   0xb   : > { %p52_p2 = scmp.eq.s32.totalorder %s721_s17, 0  ;;  %p57_p3 = scmp.ne.s32.totalorder %s705_s13, %s701_s12 }
   0xc   : > { %s1018_s20 = smov (%p37_p0, %s35_s20), 0  ;;  %p58_p5 = scmp.eq.s32.totalorder %s780_s18, 0 }
   0xd   : > { %p792_p4 = por %p52_p2, %p51_p1  ;;  %s39_s23 = ssub.s32 %s717_s16, %s1018_s20 }
   0xe   : > { %p83_p6 = scmp.eq.s32.totalorder %s780_s18, 1  ;;  %p42_p7 = scmp.eq.s32.totalorder %s39_s23, 0 }
   0xf   : > { %p800_p8 = por %p58_p5, %p57_p3  ;;  %p89_p10 = scmp.eq.s32.totalorder %s454_s19, 1 }
  0x10   : > { %p804_p9 = por %p83_p6, %p51_p1  ;;  %p497_p13 = scmp.lt.s32.totalorder %s721_s17, 2 }
  0x11   : > { %s811_s26 = scalar_select %p42_p7, %s709_s14, %s44_s21  }
  0x12   : > { %s1005_s25 = scalar_select %p804_p9, 1, 0 }
  0x13   : > { %p813_p11 = por %p89_p10, %p57_p3  ;;  %s165_s28 = sand.u32 1, %s709_s14  }
  0x14   : > { %s472_s29 = smul.u32 6, %s165_s28  ;;  %p823_p0 = pnand %p497_p13, %p792_p4 }
  0x15   : > { %s1006_s27 = scalar_select %p813_p11, 1, 0 }
  0x16   : > { %s473_s30 = smul.u32 96, %s717_s16  ;;  %s169_s8 = scalar_lea.vmem [#allocation2], %s472_s29 }
  0x17   : > { %s177_s9 = sshll.u32 %s169_s8, 4  ;;  %s835_s10 = scalar_lea.sflag [#allocation3], %s165_s28  ;;  %s832_s9 = int_to_ptr.vmem [resolvable:$true] %s177_s9 }
  0x18   : > { %s830_s7 = scalar_lea.hbm %s998_s0, %s473_s30  ;;  %p551_p3 = pneg %p823_p0 }
  0x19   : > { %s549_s11 = scalar_lea.hbm %s830_s7, 96  ;;  %s554_s23 = scalar_lea.hbm %s998_s0, 192 }
  0x1a   : > { %p550_p2 = scmp.ne.s32.totalorder %s830_s7, %s549_s11  ;;  %p555_p6 = scmp.lt.u32.totalorder %s830_s7, %s998_s0 }
  0x1b   : > { %p556_p7 = scmp.lt.u32.totalorder %s554_s23, %s549_s11  ;;  %p558_p13 = scmp.lt.u32.totalorder %s549_s11, %s830_s7 }
  0x1c   : > { %p552_p4 = pnand %p551_p3, %p550_p2 }
  0x1d   : > { %p557_p10 = por %p556_p7, %p555_p6 }
  0x1e   : > { %p553_p5 = pneg %p552_p4 }
  0x1f   : > { %p559_p12 = por %p558_p13, %p557_p10 }
  0x21   : > { %p560_p1 = pnand %p559_p12, %p553_p5 }
  0x23   : > { %563 = shalt.err (!%p560_p1)
}
  0x24   : > { %s564_s28 = scalar_lea.vmem %s832_s9, 96  ;;  %s723_s5 = smov [#allocation2]  }
  0x25   : > { %p565_p2 = scmp.ne.s32.totalorder %s832_s9, %s564_s28  ;;  %s569_s6 = sshll.u32 %s723_s5, 4  ;;  %s570_s6 = int_to_ptr.vmem [resolvable:$false] %s569_s6 }
  0x26   : > { %s571_s8 = scalar_lea.vmem %s570_s6, 192  ;;  %p572_p9 = scmp.lt.s32.totalorder %s832_s9, %s570_s6 }
  0x27   : > { %p567_p4 = pnand %p565_p2, %p551_p3  ;;  %p573_p6 = scmp.lt.s32.totalorder %s571_s8, %s564_s28 }
  0x29   : > { %p568_p11 = pneg %p567_p4  ;;  %p574_p7 = por %p573_p6, %p572_p9 }
  0x2b   : > { %p575_p10 = pnand %p574_p7, %p568_p11 }
  0x2d   : > { %578 = shalt.err (!%p575_p10)
}
  0x2e   : > { %s724_s11 = smov 32   ;;  %s725_s21 = smov 2  }
  0x2f   : > { %486 = dma.hbm_to_vmem [thread:$0]  (!%p823_p0), %s830_s7, 96, %s832_s9, %s835_s10, %s724_s11, %s724_s11, %s725_s21  }
  0x30   : > { %p185_p12 = scmp.lt.s32.totalorder %s721_s17, 3  ;;  %p1008_p1 = scmp.ge.s32.totalorder %s721_s17, 1 }
  0x32   : > { %p186_p3 = pnand %p1008_p1, %p185_p12 }
  0x33   : > { %s867_s22 = sand.u32 (!%p186_p3), 1, %s705_s13  }
  0x34   : > { %189 = sbr.rel (%p186_p3) target bundleno = 136 (0x88), region = 24  ;;  %s192_s30 = scalar_lea.sflag (!%p186_p3), [#allocation3], %s867_s22 }
  0x35   : > { %s474_s23 = smul.u32 (!%p186_p3), 6, %s867_s22 }
  0x37   : > { %s195_s29 = scalar_lea.vmem (!%p186_p3), [#allocation2], %s474_s23 }
  0x3b   : > { %688 = dma.done.wait (%p800_p8), %s192_s30, 96  }
  0x3c   : > { %690 = vsyncadd (%p800_p8), %s192_s30, 4294967200  ;;  %s459_s4 = sshll.u32 %s867_s22, 1  ;;  %v228_v0 = vld [vmem:[%s195_s29] sm:$0x3]  ;;  %v462_v1 = vld [vmem:[%s195_s29 + $0x2] sm:$0x3] }
  0x3d   : > { %s213_s7 = scalar_lea.vmem [#allocation5], %s459_s4  ;;  %v463_v2 = vld [vmem:[%s195_s29 + $0x4] sm:$0x3]  ;;  %v233_v3 = vmul.f32 0.299, %v228_v0  ;;  %s467_s10 = sshll.u32 %s713_s15, 5 }
  0x3e   : > { %s281_s9 = sshll.u32 %s213_s7, 4  ;;  %v234_v4 = vmul.f32 0.587, %v462_v1  ;;  %v236_v5 = vmul.f32 0.114, %v463_v2  ;;  %vm239_vm0 = vcmask 1041408   ;;  %s882_s5 = scalar_lea.hbm %s999_s1, %s467_s10  ;;  %s877_s9 = int_to_ptr.vmem [resolvable:$true] %s281_s9 }
  0x3f   : > { %s460_s6 = sshll.u32 %s867_s22, 3  ;;  %s257_s8 = scalar_lea.sflag [#allocation4], %s867_s22 }
  0x40   : > { %v235_v6 = vadd.f32 %v234_v4, %v233_v3  ;;  %s579_s11 = scalar_lea.vmem %s877_s9, 32  ;;  %p1009_p9 = scmp.ne.s32.totalorder %s1005_s25, 0 }
  0x41   : > { %p580_p8 = scmp.ne.s32.totalorder %s877_s9, %s579_s11  ;;  %s726_s21 = smov [#allocation5]  }
  0x42   : > { %v237_v7 = vadd.f32 %v236_v5, %v235_v6  ;;  %s583_s23 = sshll.u32 %s726_s21, 4  ;;  %s584_s23 = int_to_ptr.vmem [resolvable:$false] %s583_s23 }
  0x43   : > { %p581_p11 = pnand %p580_p8, %p1009_p9  ;;  %s585_s30 = scalar_lea.vmem %s584_s23, 64 }
  0x44   : > { %v240_v8 = vsel %vm239_vm0, %v237_v7, inf  ;;  %238 = vst [vmem:[%s213_s7] sm:$0x3] %v237_v7  ;;  %v247_v9 = vsel %vm239_vm0, %v237_v7, -inf  ;;  %p586_p5 = scmp.lt.s32.totalorder %s877_s9, %s584_s23  ;;  %p587_p13 = scmp.lt.s32.totalorder %s585_s30, %s579_s11 }
  0x45   : > { %v241_v10 = vrot.slane %v240_v8, 4  ;;  %v248_v11 = vrot.slane %v247_v9, 4  ;;  %p582_p0 = pneg %p581_p11 }
  0x46   : > { %p588_p2 = por %p587_p13, %p586_p5 }
  0x48   : > { %p589_p4 = pnand %p588_p2, %p582_p0 }
  0x4a   : > { %592 = shalt.err (!%p589_p4)
}
  0x4b   : > { %s593_s29 = scalar_lea.hbm %s882_s5, 32  ;;  %s597_s10 = scalar_lea.hbm %s999_s1, 64 }
  0x4c   : > { %p594_p6 = scmp.ne.s32.totalorder %s882_s5, %s593_s29  ;;  %p598_p12 = scmp.lt.u32.totalorder %s882_s5, %s999_s1 }
  0x4d   : > { %p599_p1 = scmp.lt.u32.totalorder %s597_s10, %s593_s29  ;;  %p601_p8 = scmp.lt.u32.totalorder %s593_s29, %s882_s5 }
  0x4e   : > { %p595_p7 = pnand %p594_p6, %p1009_p9 }
  0x4f   : > { %p600_p3 = por %p599_p1, %p598_p12 }
  0x50   : > { %p596_p10 = pneg %p595_p7 }
  0x51   : > { %p602_p11 = por %p601_p8, %p600_p3 }
  0x53   : > { %p603_p0 = pnand %p602_p11, %p596_p10 }
  0x55   : > { %606 = shalt.err (!%p603_p0)
}
  0x56   : > { %477 = dma.vmem_to_hbm [thread:$0]  (%p1009_p9), %s877_s9, 32, %s882_s5, %s257_s8   ;;  %v242_v12 = vmin.f32 %v240_v8, %v241_v10  ;;  %v249_v13 = vmax.f32 %v247_v9, %v248_v11 }
  0x57   : > { %s220_s11 = scalar_lea.vmem [#allocation6], %s460_s6  ;;  %s261_s23 = sand.u32 1, %s780_s18  }
  0x58   : > { %v243_v14 = vrot.slane %v242_v12, 2  ;;  %v250_v15 = vrot.slane %v249_v13, 2  ;;  %s295_s21 = sshll.u32 %s220_s11, 4  ;;  %s468_s30 = sshll.u32 %s713_s15, 7  ;;  %s913_s21 = int_to_ptr.vmem [resolvable:$true] %s295_s21 }
  0x59   : > { %s227_s29 = scalar_lea.vmem [#allocation8], %s460_s6  ;;  %s918_s8 = scalar_lea.hbm %s1000_s2, %s468_s30 }
  0x5a   : > { %v244_v16 = vmin.f32 %v242_v12, %v243_v14  ;;  %v251_v17 = vmax.f32 %v249_v13, %v250_v15  ;;  %s309_s4 = sshll.u32 %s227_s29, 4  ;;  %s925_s22 = scalar_lea.hbm %s1001_s3, %s468_s30  ;;  %s920_s4 = int_to_ptr.vmem [resolvable:$true] %s309_s4 }
  0x5b   : > { %s927_s6 = scalar_lea.sflag [#allocation7], %s261_s23  ;;  %s607_s7 = scalar_lea.vmem %s913_s21, 128 }
  0x5c   : > { %v245_v18 = vrot.slane %v244_v16, 1  ;;  %v252_v19 = vrot.slane %v251_v17, 1  ;;  %p608_p5 = scmp.ne.s32.totalorder %s913_s21, %s607_s7  ;;  %s727_s10 = smov [#allocation6]  }
  0x5d   : > { %s611_s24 = sshll.u32 %s727_s10, 4  ;;  %s612_s24 = int_to_ptr.vmem [resolvable:$false] %s611_s24 }
  0x5e   : > { %v246_v20 = vmin.f32 %v244_v16, %v245_v18  ;;  %v253_v21 = vmax.f32 %v251_v17, %v252_v19  ;;  %p609_p13 = pnand %p608_p5, %p1009_p9  ;;  %s613_s28 = scalar_lea.vmem %s612_s24, 256 }
  0x5f   : > { %p614_p4 = scmp.lt.s32.totalorder %s913_s21, %s612_s24  ;;  %p615_p6 = scmp.lt.s32.totalorder %s613_s28, %s607_s7 }
  0x60   : > { %254 = vst [vmem:[%s220_s11] sm:$0xff] %v246_v20  ;;  %255 = vst [vmem:[%s227_s29] sm:$0xff] %v253_v21  ;;  %p610_p2 = pneg %p609_p13 }
  0x61   : > { %p616_p7 = por %p615_p6, %p614_p4 }
  0x63   : > { %p617_p10 = pnand %p616_p7, %p610_p2 }
  0x65   : > { %620 = shalt.err (!%p617_p10)
}
  0x66   : > { %s621_s11 = scalar_lea.hbm %s918_s8, 128  ;;  %s625_s29 = scalar_lea.hbm %s1000_s2, 256 }
  0x67   : > { %p622_p12 = scmp.ne.s32.totalorder %s918_s8, %s621_s11  ;;  %p626_p8 = scmp.lt.u32.totalorder %s918_s8, %s1000_s2 }
  0x68   : > { %p627_p11 = scmp.lt.u32.totalorder %s625_s29, %s621_s11  ;;  %p629_p5 = scmp.lt.u32.totalorder %s621_s11, %s918_s8 }
  0x69   : > { %p623_p1 = pnand %p622_p12, %p1009_p9 }
  0x6a   : > { %p628_p0 = por %p627_p11, %p626_p8 }
  0x6b   : > { %p624_p3 = pneg %p623_p1 }
  0x6c   : > { %p630_p13 = por %p629_p5, %p628_p0 }
  0x6e   : > { %p631_p2 = pnand %p630_p13, %p624_p3 }
  0x70   : > { %634 = shalt.err (!%p631_p2)
}
  0x71   : > { %478 = dma.vmem_to_hbm [thread:$0]  (%p1009_p9), %s913_s21, 128, %s918_s8, %s927_s6  }
  0x72   : > { %s635_s15 = scalar_lea.vmem %s920_s4, 128  ;;  %s728_s18 = smov [#allocation8]  }
  0x73   : > { %p636_p4 = scmp.ne.s32.totalorder %s920_s4, %s635_s15  ;;  %s639_s7 = sshll.u32 %s728_s18, 4  ;;  %s640_s7 = int_to_ptr.vmem [resolvable:$false] %s639_s7 }
  0x74   : > { %s641_s10 = scalar_lea.vmem %s640_s7, 256  ;;  %p642_p10 = scmp.lt.s32.totalorder %s920_s4, %s640_s7 }
  0x75   : > { %p637_p6 = pnand %p636_p4, %p1009_p9  ;;  %p643_p12 = scmp.lt.s32.totalorder %s641_s10, %s635_s15 }
  0x77   : > { %p638_p7 = pneg %p637_p6  ;;  %p644_p1 = por %p643_p12, %p642_p10 }
  0x79   : > { %p645_p3 = pnand %p644_p1, %p638_p7 }
  0x7b   : > { %648 = shalt.err (!%p645_p3)
}
  0x7c   : > { %s649_s21 = scalar_lea.hbm %s925_s22, 128  ;;  %s653_s28 = scalar_lea.hbm %s1001_s3, 256 }
  0x7d   : > { %p650_p8 = scmp.ne.s32.totalorder %s925_s22, %s649_s21  ;;  %p654_p5 = scmp.lt.u32.totalorder %s925_s22, %s1001_s3 }
  0x7e   : > { %p655_p13 = scmp.lt.u32.totalorder %s653_s28, %s649_s21  ;;  %p657_p4 = scmp.lt.u32.totalorder %s649_s21, %s925_s22 }
  0x7f   : > { %p651_p11 = pnand %p650_p8, %p1009_p9 }
  0x80   : > { %p656_p2 = por %p655_p13, %p654_p5 }
  0x81   : > { %p652_p0 = pneg %p651_p11 }
  0x82   : > { %p658_p6 = por %p657_p4, %p656_p2 }
  0x84   : > { %p659_p7 = pnand %p658_p6, %p652_p0 }
  0x86   : > { %662 = shalt.err (!%p659_p7)
}
  0x87   : > { %479 = dma.vmem_to_hbm [thread:$0]  (%p1009_p9), %s920_s4, 128, %s925_s22, %s927_s6  }
  0x88 PF: > { %s321_s30 = sand.u32 1, %s701_s12   ;;  %p1010_p10 = scmp.ne.s32.totalorder %s1006_s27, 0 }
  0x89   : > { %p1011_p12 = scmp.ge.s32.totalorder %s721_s17, 2  ;;  %s322_s29 = scalar_lea.sflag [#allocation4], %s321_s30 }
  0x8b   : > { %p488_p1 = pnand %p1011_p12, %p1010_p10 }
  0x8d   : > { %692 = dma.done.wait (!%p488_p1), %s322_s29, 32  }
  0x8e   : > { %694 = vsyncadd (!%p488_p1), %s322_s29, 4294967264  ;;  %s330_s9 = sand.u32 1, %s454_s19  }
  0x8f   : > { %s331_s5 = scalar_lea.sflag [#allocation7], %s330_s9 }
  0x90   : > { %696 = dma.done.wait (!%p488_p1), %s331_s5, 256  }
  0x91   : > { %698 = vsyncadd (!%p488_p1), %s331_s5, 4294967040  ;;  %s23_s17 = sadd.s32 1, %s721_s17   ;;  %s1012_s12 = smov %s705_s13 }
  0x92   : > { %p20_p9 = scmp.ge.s32.totalorder %s23_s17, 4   ;;  %s1013_s13 = smov %s709_s14 }
  0x93   : > { %s1014_s14 = smov %s811_s26  ;;  %s1015_s15 = smov %s717_s16 }
  0x94   : > { %s1016_s16 = smov %s1018_s20  ;;  %22 = sbr.rel (!%p20_p9) target bundleno = 8 (0x8), region = 103 }
  0x9b   :  { %345 = vsyncpa [#allocation3], 1 }
  0x9c   :  { %347 = vsyncpa [#allocation3 + $0x1], 1 }
  0x9d   :  { %348 = vsyncpa [#allocation4], 1 }
  0x9e   :  { %350 = vsyncpa [#allocation4 + $0x1], 1 }
  0x9f   :  { %351 = vsyncpa [#allocation7], 1 }
  0xa0   :  { %353 = vsyncpa [#allocation7 + $0x1], 1 }

</bundles_post_ra>
